<compile_context>
chip_gen: v6e
topology: v6e:2x2x1
jax: 0.10.0
libtpu: 0.0.40
codegen_flags: <defaults>
</compile_context>

<pallas_src>
import jax
import jax.numpy as jnp
from jax import lax
from jax.experimental import pallas as pl
from jax.experimental.pallas import tpu as pltpu


_LOWBIAS32_C1 = 0x7FEB352D
_LOWBIAS32_C2 = 0x846CA68B
_F32_ONE_BITS = 0x3F800000


def _uniform_random_kernel(seed_ref, o_ref):
    """Fill o_ref (TM, L) with uniform [0, 1) f32 from a counter-based hash."""
    tm, lanes = o_ref.shape

    # Global element index of every output element (unique across the grid):
    # each block therefore produces an independent stream with a shared seed.
    row_ids = lax.broadcasted_iota(jnp.int32, (tm, lanes), 0)
    col_ids = lax.broadcasted_iota(jnp.int32, (tm, lanes), 1)
    base_row = pl.program_id(0) * tm
    idx = (base_row + row_ids) * lanes + col_ids

    # lowbias32-style integer avalanche hash (pure VPU xor/shift/mul ops).
    h = idx.astype(jnp.uint32) ^ seed_ref[0].astype(jnp.uint32)
    h = h ^ (h >> 16)
    h = h * jnp.uint32(_LOWBIAS32_C1)
    h = h ^ (h >> 15)
    h = h * jnp.uint32(_LOWBIAS32_C2)
    h = h ^ (h >> 16)

    # Exponent trick: top 23 random bits become the mantissa of a float in
    # [1, 2); subtract 1 to land in [0, 1).  Avoids int->float convert + mul.
    f_bits = (h >> 9) | jnp.uint32(_F32_ONE_BITS)
    o_ref[...] = lax.bitcast_convert_type(f_bits, jnp.float32) - jnp.float32(1.0)


def _choose_layout(n):
    """Pick a lane-dense (rows, lanes) slab and a row-tile TM for the grid."""
    for cand in (1024, 512, 256, 128):
        if n % cand == 0:
            lanes = cand
            break
    else:
        raise ValueError("total element count must be a multiple of 128")
    rows = n // lanes

    # Largest row tile (from an 8-aligned candidate list) that divides `rows`
    # and keeps one output tile <= ~4 MiB so the double-buffered output stays
    # comfortably inside scoped VMEM on v5e/v6e/v7x.
    max_tile_bytes = 4 * 1024 * 1024
    max_tm = max(8, max_tile_bytes // (lanes * 4))
    tm = rows  # fallback: single full block (fine for small/odd shapes)
    for cand in (2048, 1024, 512, 256, 128, 64, 32, 16, 8):
        if cand <= max_tm and rows % cand == 0:
            tm = cand
            break
    return lanes, rows, tm


def model_forward(x, seed: int = 0):
    """Reproduces Model.forward: ignores x's values, returns uniform [0,1) of x.shape."""
    n = x.size
    lanes, rows, tm = _choose_layout(n)
    grid = rows // tm
    seed_arr = jnp.asarray([seed], dtype=jnp.int32)

    kwargs = {}
    if jax.default_backend() == "tpu":
        kwargs["compiler_params"] = pltpu.CompilerParams(
            dimension_semantics=("parallel",),  # shard grid across TCs (v7x megacore)
            vmem_limit_bytes=max(4 * tm * lanes * 4, 4 * 1024 * 1024),
        )

    out_flat = pl.pallas_call(
        _uniform_random_kernel,
        out_shape=jax.ShapeDtypeStruct((rows, lanes), jnp.float32),
        grid=(grid,),
        in_specs=[pl.BlockSpec(memory_space=pltpu.MemorySpace.SMEM)],  # seed scalar only
        out_specs=pl.BlockSpec((tm, lanes), lambda i: (i, 0)),
        **kwargs,
    )(seed_arr)

    return out_flat.reshape(x.shape)


def init_unused_params(key):
    """Deterministic init of the module's dead Linear(1, 2) + Softmax params.

    They are never used in forward(), mirroring the PyTorch module exactly.
    """
    kw, kb = jax.random.split(key)
    w = jax.random.uniform(kw, (2, 1), jnp.float32, -1.0, 1.0)  # nn.Linear(1,2).weight
    b = jax.random.uniform(kb, (2,), jnp.float32, -1.0, 1.0)    # nn.Linear(1,2).bias
    return {"linear_w": w, "linear_b": b}


if __name__ == "__main__":
    key = jax.random.PRNGKey(0)
    _params = init_unused_params(key)  # defined but unused, as in the PyTorch model

    # Small input consistent with the forward (only x.shape matters).
    # 2*4*16*16 = 2048 elements -> (2, 1024) lane-dense slab, single block.
    x = jax.random.normal(key, (2, 4, 16, 16), dtype=jnp.float32)

    y = model_forward(x, seed=0)
    y = jax.block_until_ready(y)

    assert y.shape == x.shape
    assert y.dtype == jnp.float32
    assert bool(jnp.all(y >= 0.0)) and bool(jnp.all(y < 1.0))
    assert float(jnp.std(y)) > 0.01  # actually random, not a constant fill

    print("KERNEL_OK")
</pallas_src>

<mosaic_0001>
module attributes {stable_mosaic.version = 11 : i64} {
  func.func @_uniform_random_kernel(%arg0: i32, %arg1: memref<1xi32, #tpu.memory_space<smem>>, %arg2: memref<2x1024xf32, #tpu.memory_space<vmem>>) attributes {dimension_semantics = [#tpu.dimension_semantics<arbitrary>], iteration_bounds = array<i64: 1>, scalar_prefetch = 0 : i64, scratch_operands = 0 : i64, tpu.core_type = #tpu.core_type<tc>, window_params = [{transform_indices = @transform_0, window_bounds = array<i64: 1>}, {transform_indices = @transform_1, window_bounds = array<i64: 2, 1024>}]} {
    %0 = tpu.iota {dimensions = array<i32: 0>} : vector<2x1024xi32>
    %1 = tpu.iota {dimensions = array<i32: 1>} : vector<2x1024xi32>
    %c2_i32 = arith.constant 2 : i32
    %2 = arith.muli %arg0, %c2_i32 : i32
    %3 = vector.broadcast %2 : i32 to vector<2x1024xi32>
    %4 = arith.addi %3, %0 : vector<2x1024xi32>
    %c1024_i32 = arith.constant 1024 : i32
    %5 = vector.broadcast %c1024_i32 : i32 to vector<2x1024xi32>
    %6 = arith.muli %4, %5 : vector<2x1024xi32>
    %7 = arith.addi %6, %1 : vector<2x1024xi32>
    %c0 = arith.constant 0 : index
    %8 = memref.load %arg1[%c0] : memref<1xi32, #tpu.memory_space<smem>>
    %9 = vector.broadcast %8 : i32 to vector<2x1024xi32>
    %10 = arith.xori %7, %9 : vector<2x1024xi32>
    %c16_i32 = arith.constant 16 : i32
    %11 = vector.broadcast %c16_i32 : i32 to vector<2x1024xi32>
    %12 = arith.shrui %10, %11 : vector<2x1024xi32>
    %13 = arith.xori %10, %12 : vector<2x1024xi32>
    %c2146121005_i32 = arith.constant 2146121005 : i32
    %14 = vector.broadcast %c2146121005_i32 : i32 to vector<2x1024xi32>
    %15 = arith.muli %13, %14 : vector<2x1024xi32>
    %c15_i32 = arith.constant 15 : i32
    %16 = vector.broadcast %c15_i32 : i32 to vector<2x1024xi32>
    %17 = arith.shrui %15, %16 : vector<2x1024xi32>
    %18 = arith.xori %15, %17 : vector<2x1024xi32>
    %c-2073254261_i32 = arith.constant -2073254261 : i32
    %19 = vector.broadcast %c-2073254261_i32 : i32 to vector<2x1024xi32>
    %20 = arith.muli %18, %19 : vector<2x1024xi32>
    %c16_i32_0 = arith.constant 16 : i32
    %21 = vector.broadcast %c16_i32_0 : i32 to vector<2x1024xi32>
    %22 = arith.shrui %20, %21 : vector<2x1024xi32>
    %23 = arith.xori %20, %22 : vector<2x1024xi32>
    %c9_i32 = arith.constant 9 : i32
    %24 = vector.broadcast %c9_i32 : i32 to vector<2x1024xi32>
    %25 = arith.shrui %23, %24 : vector<2x1024xi32>
    %c1065353216_i32 = arith.constant 1065353216 : i32
    %26 = vector.broadcast %c1065353216_i32 : i32 to vector<2x1024xi32>
    %27 = arith.ori %25, %26 : vector<2x1024xi32>
    %28 = tpu.bitcast %27 : vector<2x1024xi32> -> vector<2x1024xf32>
    %cst = arith.constant 1.000000e+00 : f32
    %29 = vector.broadcast %cst : f32 to vector<2x1024xf32>
    %30 = arith.subf %28, %29 : vector<2x1024xf32>
    %c0_1 = arith.constant 0 : index
    %c0_2 = arith.constant 0 : index
    %31 = vector.load %arg2[%c0_1, %c0_2] : memref<2x1024xf32, #tpu.memory_space<vmem>>, vector<2x1024xf32>
    tpu.vector_store %arg2[%c0_1, %c0_2], %30 {strides = array<i32>} : memref<2x1024xf32, #tpu.memory_space<vmem>>, vector<2x1024xf32>,
    return
  }
  func.func @transform_0(%arg0: i32) -> i32 {
    %c0_i32 = arith.constant 0 : i32
    %c0_i32_0 = arith.constant 0 : i32
    return %c0_i32 : i32
  }
  func.func @transform_1(%arg0: i32) -> (i32, i32) {
    %c0_i32 = arith.constant 0 : i32
    %c0_i32_0 = arith.constant 0 : i32
    return %arg0, %c0_i32 : i32, i32
  }
}

</mosaic_0001>

<bundles_post_ra>
// kernel: tpu_custom_call.1
= control target key start
LH: loop header
LB: loop body
LE: loop exit
PB: predicated region body
PF: predicated region fallthrough
CT: control target
= control target key end

     0   :  { %v10_v0 = vlaneseq  ;;  %s255_s0 = inlined_call_operand.<no memory space> [shape: s32[1], index: 0, kind: input, shape index: {}]   ;;  %s256_s1 = inlined_call_operand.hbm [shape: f32[2,1024], index: 1, kind: output, shape index: {}]  }
   0x1   :  { %7 = vsyncpa [#allocation4], 0  ;;  %v231_v1 = vmov 1983009808   ;;  %v34_v5 = vstv %s255_s0  ;;  %s232_s0 = smov [#allocation3]  }
   0x2   :  { %v150_v2 = vunpack.c.l.s4 %v231_v1  ;;  %v11_v3 = vshrl.u32 %v10_v0, 7  ;;  %v13_v4 = vand.u32 127, %v10_v0  ;;  %s191_s8 = sshll.u32 %s232_s0, 4  ;;  %s192_s8 = int_to_ptr.vmem [resolvable:$true] %s191_s8 }
   0x3   :  { %s209_s9 = scalar_lea.vmem %s192_s8, 256  ;;  %p214_p1 = scmp.lt.s32.totalorder %s192_s8, %s192_s8 }
   0x4   :  { %v14_v6 = vadd.s32 128, %v13_v4  ;;  %v15_v7 = vadd.s32 256, %v13_v4  ;;  %v16_v8 = vadd.s32 384, %v13_v4  ;;  %v24_v9 = vmul.u32 1024, %v11_v3  ;;  %p210_p0 = scmp.ne.s32.totalorder %s192_s8, %s209_s9  ;;  %p215_p2 = scmp.lt.s32.totalorder %s209_s9, %s209_s9 }
   0x5   :  { %v151_v10 = vunpack.c.0.s8 %v150_v2  ;;  %v17_v11 = vadd.s32 512, %v13_v4  ;;  %v18_v12 = vadd.s32 640, %v13_v4  ;;  %v19_v13 = vadd.s32 768, %v13_v4 }
   0x6   :  { %v25_v14 = vadd.s32 %v24_v9, %v13_v4  ;;  %v26_v15 = vadd.s32 %v24_v9, %v14_v6  ;;  %v27_v16 = vadd.s32 %v24_v9, %v15_v7  ;;  %v28_v17 = vadd.s32 %v24_v9, %v16_v8  ;;  %p216_p3 = por %p215_p2, %p214_p1 }
   0x7   :  { %v20_v18 = vadd.s32 896, %v13_v4  ;;  %v29_v19 = vadd.s32 %v24_v9, %v17_v11  ;;  %v30_v20 = vadd.s32 %v24_v9, %v18_v12  ;;  %v31_v21 = vadd.s32 %v24_v9, %v19_v13 }
   0x8   :  { %v35_v22 = vxor.u32 %v34_v5, %v25_v14  ;;  %v36_v23 = vxor.u32 %v34_v5, %v26_v15  ;;  %v37_v24 = vxor.u32 %v34_v5, %v27_v16  ;;  %v38_v25 = vxor.u32 %v34_v5, %v28_v17  ;;  %p217_p4 = pnand %p216_p3, %p210_p0 }
   0x9   :  { %v32_v26 = vadd.s32 %v24_v9, %v20_v18  ;;  %v39_v27 = vxor.u32 %v34_v5, %v29_v19  ;;  %v40_v28 = vxor.u32 %v34_v5, %v30_v20  ;;  %v41_v29 = vxor.u32 %v34_v5, %v31_v21 }
   0xa   :  { %v43_v30 = vshrl.u32 %v35_v22, 16  ;;  %v44_v31 = vshrl.u32 %v36_v23, 16  ;;  %v45_v32 = vshrl.u32 %v37_v24, 16  ;;  %v46_v33 = vshrl.u32 %v38_v25, 16 }
   0xb   :  { %v42_v34 = vxor.u32 %v34_v5, %v32_v26  ;;  %v47_v35 = vshrl.u32 %v39_v27, 16  ;;  %v48_v36 = vshrl.u32 %v40_v28, 16  ;;  %v49_v37 = vshrl.u32 %v41_v29, 16 }
   0xc   :  { %v51_v38 = vxor.u32 %v43_v30, %v35_v22  ;;  %v52_v39 = vxor.u32 %v44_v31, %v36_v23  ;;  %v53_v40 = vxor.u32 %v45_v32, %v37_v24  ;;  %v54_v41 = vxor.u32 %v46_v33, %v38_v25 }
   0xd   :  { %v50_v42 = vshrl.u32 %v42_v34, 16  ;;  %v55_v43 = vxor.u32 %v47_v35, %v39_v27  ;;  %v56_v44 = vxor.u32 %v48_v36, %v40_v28  ;;  %v57_v45 = vxor.u32 %v49_v37, %v41_v29 }
   0xe   :  { %v59_v46 = vmul.u32 2146121005, %v51_v38  ;;  %v60_v47 = vmul.u32 2146121005, %v52_v39  ;;  %v246_v50 = vsub.s32 %v151_v10, %v11_v3 }
   0xf   :  { %v61_v48 = vmul.u32 2146121005, %v53_v40  ;;  %v62_v49 = vmul.u32 2146121005, %v54_v41  ;;  %v58_v51 = vxor.u32 %v50_v42, %v42_v34 }
  0x10   :  { %v67_v52 = vshrl.u32 %v59_v46, 15  ;;  %v68_v53 = vshrl.u32 %v60_v47, 15  ;;  %v63_v54 = vmul.u32 2146121005, %v55_v43  ;;  %v64_v55 = vmul.u32 2146121005, %v56_v44 }
  0x11   :  { %v69_v56 = vshrl.u32 %v61_v48, 15  ;;  %v70_v57 = vshrl.u32 %v62_v49, 15  ;;  %v65_v58 = vmul.u32 2146121005, %v57_v45  ;;  %v66_v59 = vmul.u32 2146121005, %v58_v51 }
  0x12   :  { %v75_v60 = vxor.u32 %v67_v52, %v59_v46  ;;  %v76_v61 = vxor.u32 %v68_v53, %v60_v47  ;;  %v71_v62 = vshrl.u32 %v63_v54, 15  ;;  %v72_v63 = vshrl.u32 %v64_v55, 15 }
  0x13   :  { %v77_v0 = vxor.u32 %v69_v56, %v61_v48  ;;  %v78_v1 = vxor.u32 %v70_v57, %v62_v49  ;;  %v73_v2 = vshrl.u32 %v65_v58, 15  ;;  %v74_v4 = vshrl.u32 %v66_v59, 15 }
  0x14   :  { %v83_v5 = vmul.u32 2221713035, %v75_v60  ;;  %v84_v3 = vmul.u32 2221713035, %v76_v61  ;;  %v79_v6 = vxor.u32 %v71_v62, %v63_v54  ;;  %v80_v7 = vxor.u32 %v72_v63, %v64_v55 }
  0x15   :  { %v85_v8 = vmul.u32 2221713035, %v77_v0  ;;  %v86_v9 = vmul.u32 2221713035, %v78_v1  ;;  %v81_v10 = vxor.u32 %v73_v2, %v65_v58  ;;  %v82_v11 = vxor.u32 %v74_v4, %v66_v59 }
  0x16   :  { %v91_v12 = vshrl.u32 %v83_v5, 16  ;;  %v92_v13 = vshrl.u32 %v84_v3, 16  ;;  %v87_v14 = vmul.u32 2221713035, %v79_v6  ;;  %v88_v15 = vmul.u32 2221713035, %v80_v7 }
  0x17   :  { %v93_v16 = vshrl.u32 %v85_v8, 16  ;;  %v94_v17 = vshrl.u32 %v86_v9, 16  ;;  %v89_v18 = vmul.u32 2221713035, %v81_v10  ;;  %v90_v19 = vmul.u32 2221713035, %v82_v11 }
  0x18   :  { %v99_v20 = vxor.u32 %v91_v12, %v83_v5  ;;  %v100_v21 = vxor.u32 %v92_v13, %v84_v3  ;;  %v95_v22 = vshrl.u32 %v87_v14, 16  ;;  %v96_v23 = vshrl.u32 %v88_v15, 16 }
  0x19   :  { %v101_v24 = vxor.u32 %v93_v16, %v85_v8  ;;  %v102_v25 = vxor.u32 %v94_v17, %v86_v9  ;;  %v97_v26 = vshrl.u32 %v89_v18, 16  ;;  %v98_v27 = vshrl.u32 %v90_v19, 16 }
  0x1a   :  { %v107_v28 = vshrl.u32 %v99_v20, 9  ;;  %v108_v29 = vshrl.u32 %v100_v21, 9  ;;  %v103_v30 = vxor.u32 %v95_v22, %v87_v14  ;;  %v104_v31 = vxor.u32 %v96_v23, %v88_v15 }
  0x1b   :  { %v109_v32 = vshrl.u32 %v101_v24, 9  ;;  %v110_v33 = vshrl.u32 %v102_v25, 9  ;;  %v105_v34 = vxor.u32 %v97_v26, %v89_v18  ;;  %v106_v35 = vxor.u32 %v98_v27, %v90_v19 }
  0x1c   :  { %v115_v36 = vor.u32 1065353216, %v107_v28  ;;  %v116_v37 = vor.u32 1065353216, %v108_v29  ;;  %v111_v38 = vshrl.u32 %v103_v30, 9  ;;  %v112_v39 = vshrl.u32 %v104_v31, 9 }
  0x1d   :  { %v117_v40 = vor.u32 1065353216, %v109_v32  ;;  %v118_v41 = vor.u32 1065353216, %v110_v33  ;;  %v113_v42 = vshrl.u32 %v105_v34, 9  ;;  %v114_v43 = vshrl.u32 %v106_v35, 9 }
  0x1e   :  { %v199_v44 = vadd.f32 -1.0, %v115_v36  ;;  %v200_v45 = vadd.f32 -1.0, %v116_v37  ;;  %v119_v46 = vor.u32 1065353216, %v111_v38  ;;  %v120_v47 = vor.u32 1065353216, %v112_v39 }
  0x1f   :  { %v201_v48 = vadd.f32 -1.0, %v117_v40  ;;  %v202_v49 = vadd.f32 -1.0, %v118_v41  ;;  %v121_v51 = vor.u32 1065353216, %v113_v42  ;;  %v122_v52 = vor.u32 1065353216, %v114_v43 }
  0x20   :  { %v147_v53 = vcombine.low %v199_v44, %v200_v45  ;;  %v203_v54 = vadd.f32 -1.0, %v119_v46  ;;  %v204_v55 = vadd.f32 -1.0, %v120_v47 }
  0x21   :  { %v148_v56 = vcombine.low %v201_v48, %v202_v49  ;;  %v205_v57 = vadd.f32 -1.0, %v121_v51  ;;  %v206_v58 = vadd.f32 -1.0, %v122_v52 }
  0x22   :  { %v155_v59 = vrot.slane %v147_v53, %v246_v50  ;;  %v164_v60 = vcombine.low %v203_v54, %v204_v55 }
  0x23   :  { %v162_v61 = vrot.slane %v148_v56, %v246_v50  ;;  %v165_v62 = vcombine.low %v205_v57, %v206_v58 }
  0x24   :  { %v172_v63 = vrot.slane %v164_v60, %v246_v50 }
  0x25   :  { %v163_v0 = vcombine.low %v155_v59, %v162_v61  ;;  %v179_v1 = vrot.slane %v165_v62, %v246_v50 }
  0x27   :  { %183 = vst [vmem:[#allocation3] sm:$0xff] %v163_v0  ;;  %v180_v2 = vcombine.low %v172_v63, %v179_v1 }
  0x29   :  { %184 = vst [vmem:[#allocation3 + $0x8] sm:$0xff] %v180_v2 }
  0x2a   :  { %220 = shalt.err (!%p217_p4)
}
  0x2b   :  { %194 = dma.vmem_to_hbm [thread:$0]  %s192_s8, 256, %s256_s1, [#allocation4]  }
  0x2c   :  { %229 = dma.done.wait [#allocation4], 256  }
  0x2d   :  { %230 = vsyncadd [#allocation4], 4294967040 }
  0x2e   :  { %198 = vsyncpa [#allocation4], 1 }

</bundles_post_ra>
